<compile_context>
chip_gen: v5e
topology: v5e:2x2
jax: 0.10.0
libtpu: 0.0.40
codegen_flags: <defaults>
</compile_context>

<pallas_src>
import jax
import jax.numpy as jnp
from jax.experimental import pallas as pl
from jax.experimental.pallas import tpu as pltpu

_LANE = 128
_SUBLANE = 8
_MIB = 1024 * 1024
_NEG_SLOPE = 0.2          # matches nn.LeakyReLU(0.2) in the original module
_MAX_BLOCK_B = 8192       # amortizes ~0.35us/grid-step overhead at large B


def _leaky_relu(h, slope=_NEG_SLOPE):
    return jnp.where(h >= 0, h, slope * h)


def _round_up(n, m):
    return ((n + m - 1) // m) * m


def _pad2(a, rows, cols):
    r, c = a.shape
    return jnp.pad(a, ((0, rows - r), (0, cols - c)))


def ranknet_kernel(x_ref, w1_ref, w2_ref, w3_ref, w4_ref, b123_ref, b4_ref,
                   o_ref):
    """Fused 4-layer MLP: (Linear -> LeakyReLU(0.2)) x3 -> Linear."""
    # x arrives f32 and unpadded; cast to bf16 in-kernel so every matmul runs
    # at the native MXU bf16 rate with f32 accumulation.
    x = x_ref[...].astype(jnp.bfloat16)

    h = jnp.dot(x, w1_ref[...], preferred_element_type=jnp.float32)
    h = _leaky_relu(h + b123_ref[0:1, :]).astype(jnp.bfloat16)

    h = jnp.dot(h, w2_ref[...], preferred_element_type=jnp.float32)
    h = _leaky_relu(h + b123_ref[1:2, :]).astype(jnp.bfloat16)

    h = jnp.dot(h, w3_ref[...], preferred_element_type=jnp.float32)
    h = _leaky_relu(h + b123_ref[2:3, :]).astype(jnp.bfloat16)

    h = jnp.dot(h, w4_ref[...], preferred_element_type=jnp.float32) + b4_ref[...]

    # Only the first `outputs` lanes are real; store the narrow final block
    # directly (masked vst) so the HBM output carries no zero padding.
    o_ref[...] = h[:, : o_ref.shape[-1]].astype(o_ref.dtype)


def _vmem_plan():
    """Generation-aware (budget, scoped-limit) in bytes."""
    try:
        cap = int(pltpu.get_tpu_info().vmem_capacity_bytes)
    except Exception:  # no TPU info available -> assume the smallest (v7x/TC)
        cap = 64 * _MIB
    cap = max(cap, 32 * _MIB)
    budget = max(12 * _MIB, min(int(cap * 0.55), 48 * _MIB))
    limit = min(cap, budget + 16 * _MIB)
    return budget, limit


def _pick_block_b(B, d_in, h_p, d_out, *, vmem_budget):
    """Largest multiple-of-8 batch tile (<= _MAX_BLOCK_B) fitting the budget."""
    lane_in = _round_up(max(d_in, 1), _LANE)
    lane_out = _round_up(max(d_out, 1), _LANE)
    # Resident weights (bf16, single-buffered) + biases (f32), lane/sublane
    # padded in VMEM.
    w_bytes = (2 * (_round_up(d_in, 16) * h_p + 2 * h_p * h_p + h_p * lane_out)
               + 4 * (_SUBLANE * h_p + _SUBLANE * lane_out))
    avail = max(vmem_budget - w_bytes, 1 * _MIB)
    # Per batch row (lane-padded VMEM layout):
    #   x block (f32) and out block (f32), each double-buffered by the pipeline,
    #   plus in-kernel intermediates: bf16 copy of x, f32 accumulator + bf16
    #   recast of h (+ headroom for a second live f32 during the add/relu).
    per_row = (2 * 4 * lane_in + 2 * 4 * lane_out
               + 2 * lane_in + (4 + 2 + 4) * h_p)
    bb = int(avail // per_row)
    bb = min(bb, _MAX_BLOCK_B, _round_up(B, _SUBLANE))
    if B > _SUBLANE:
        # At least 2 grid steps so v7x's second TensorCore gets work
        # (harmless on single-TC v5e/v6e).
        bb = min(bb, _round_up(pl.cdiv(B, 2), _SUBLANE))
    bb = max(bb, _SUBLANE)
    return (bb // _SUBLANE) * _SUBLANE


def ranknet_forward(x, params, *, block_b=None):
    """Fused MLP forward. x: (B, inputs) float32. Returns (B, outputs) float32."""
    w1, b1, w2, b2, w3, b3, w4, b4 = (
        params["w1"], params["b1"], params["w2"], params["b2"],
        params["w3"], params["b3"], params["w4"], params["b4"],
    )
    B, D_in = x.shape
    H = w1.shape[1]
    D_out = w4.shape[1]

    H_p = _round_up(H, _LANE)          # lane-dense hidden width (zero pad: exact)
    D_out_p = _round_up(D_out, _LANE)  # only for the padded w4/b4 operands

    vmem_budget, vmem_limit = _vmem_plan()
    if block_b is None:
        block_b = _pick_block_b(B, D_in, H_p, D_out, vmem_budget=vmem_budget)
    block_b = max(_SUBLANE, _round_up(block_b, _SUBLANE))
    grid = (pl.cdiv(B, block_b),)

    # Weight-only padding/casting (fixed O(H^2) cost, independent of B).
    w1p = _pad2(w1, D_in, H_p).astype(jnp.bfloat16)
    w2p = _pad2(w2, H_p, H_p).astype(jnp.bfloat16)
    w3p = _pad2(w3, H_p, H_p).astype(jnp.bfloat16)
    w4p = _pad2(w4, H_p, D_out_p).astype(jnp.bfloat16)
    b123p = _pad2(jnp.concatenate([b1, b2, b3], axis=0), 3, H_p).astype(jnp.float32)
    b4p = _pad2(b4, 1, D_out_p).astype(jnp.float32)

    flops = 2 * B * (D_in * H_p + 2 * H_p * H_p + H_p * D_out_p)
    bytes_accessed = (x.size * 4 + B * D_out * 4
                      + (w1p.size + w2p.size + w3p.size + w4p.size) * 2
                      + (b123p.size + b4p.size) * 4)
    cost = pl.CostEstimate(flops=int(flops), transcendentals=0,
                           bytes_accessed=int(bytes_accessed))

    def make_call(single_buffer_weights):
        if single_buffer_weights:
            # Grid-invariant operands (index_map always (0,0)): a single
            # resident VMEM buffer; the pipeline's 2nd buffer is wasted VMEM.
            def wspec(shape):
                return pl.BlockSpec(shape, lambda i: (0, 0),
                                    pipeline_mode=pl.Buffered(1))
        else:
            def wspec(shape):
                return pl.BlockSpec(shape, lambda i: (0, 0))

        return pl.pallas_call(
            ranknet_kernel,
            out_shape=jax.ShapeDtypeStruct((B, D_out), jnp.float32),
            grid_spec=pltpu.PrefetchScalarGridSpec(
                num_scalar_prefetch=0,
                grid=grid,
                in_specs=[
                    pl.BlockSpec((block_b, D_in), lambda i: (i, 0)),  # x (unpadded)
                    wspec((D_in, H_p)),       # w1
                    wspec((H_p, H_p)),        # w2
                    wspec((H_p, H_p)),        # w3
                    wspec((H_p, D_out_p)),    # w4
                    wspec((3, H_p)),          # b1..b3 (consolidated)
                    wspec((1, D_out_p)),      # b4
                ],
                out_specs=pl.BlockSpec((block_b, D_out), lambda i: (i, 0)),
            ),
            compiler_params=pltpu.CompilerParams(
                dimension_semantics=("parallel",),
                vmem_limit_bytes=int(vmem_limit)),
            cost_estimate=cost,
        )

    args = (x, w1p, w2p, w3p, w4p, b123p, b4p)
    try:
        return make_call(True)(*args)
    except Exception:
        # TODO(synk): drop this fallback once pl.Buffered(1) single-buffering of
        # grid-invariant operands is guaranteed on every deployed jax version.
        return make_call(False)(*args)


def init_params(key, inputs, hidden, outputs):
    """Deterministic init mimicking nn.Linear's U(-1/sqrt(fan_in), 1/sqrt(fan_in))."""
    ks = jax.random.split(key, 8)

    def lin(kw, kb, fan_in, fan_out):
        bound = 1.0 / jnp.sqrt(fan_in)
        w = jax.random.uniform(kw, (fan_in, fan_out), jnp.float32, -bound, bound)
        b = jax.random.uniform(kb, (1, fan_out), jnp.float32, -bound, bound)
        return w, b

    w1, b1 = lin(ks[0], ks[1], inputs, hidden)
    w2, b2 = lin(ks[2], ks[3], hidden, hidden)
    w3, b3 = lin(ks[4], ks[5], hidden, hidden)
    w4, b4 = lin(ks[6], ks[7], hidden, outputs)
    return {"w1": w1, "b1": b1, "w2": w2, "b2": b2,
            "w3": w3, "b3": b3, "w4": w4, "b4": b4}


def ranknet_reference(x, p, *, compute_dtype=jnp.float32):
    """Plain-JAX reference; compute_dtype controls the matmul operand dtype."""
    def cd(a):
        return a.astype(compute_dtype)

    h = _leaky_relu(jnp.dot(cd(x), cd(p["w1"]),
                            preferred_element_type=jnp.float32) + p["b1"])
    h = _leaky_relu(jnp.dot(cd(h), cd(p["w2"]),
                            preferred_element_type=jnp.float32) + p["b2"])
    h = _leaky_relu(jnp.dot(cd(h), cd(p["w3"]),
                            preferred_element_type=jnp.float32) + p["b3"])
    return jnp.dot(cd(h), cd(p["w4"]),
                   preferred_element_type=jnp.float32) + p["b4"]


if __name__ == "__main__":
    key = jax.random.PRNGKey(0)
    k_x, k_x2, k_p = jax.random.split(key, 3)

    B, INPUTS, HIDDEN, OUTPUTS = 16, 16, 32, 4
    x = jax.random.normal(k_x, (B, INPUTS), jnp.float32)
    params = init_params(k_p, INPUTS, HIDDEN, OUTPUTS)

    out = jax.block_until_ready(ranknet_forward(x, params))
    assert out.shape == (B, OUTPUTS)

    # Tight check against a reference using the same bf16 matmul operands.
    ref_bf16 = ranknet_reference(x, params, compute_dtype=jnp.bfloat16)
    assert jnp.allclose(out, ref_bf16, atol=2e-3, rtol=2e-3), (
        float(jnp.max(jnp.abs(out - ref_bf16))))

    # Loose sanity check against the full-f32 reference (bf16 quantization only).
    ref_f32 = ranknet_reference(x, params, compute_dtype=jnp.float32)
    assert jnp.allclose(out, ref_f32, atol=5e-2, rtol=5e-2), (
        float(jnp.max(jnp.abs(out - ref_f32))))

    # Ragged batch (B not a multiple of the block): the kernel writes the final
    # (B, outputs) shape directly; out-of-bounds rows are masked on store.
    B2 = 13
    x2 = jax.random.normal(k_x2, (B2, INPUTS), jnp.float32)
    out2 = jax.block_until_ready(ranknet_forward(x2, params))
    assert out2.shape == (B2, OUTPUTS)
    ref2 = ranknet_reference(x2, params, compute_dtype=jnp.bfloat16)
    assert jnp.allclose(out2, ref2, atol=2e-3, rtol=2e-3), (
        float(jnp.max(jnp.abs(out2 - ref2))))

    print("KERNEL_OK")
</pallas_src>

<mosaic_0001>
module attributes {stable_mosaic.version = 11 : i64} {
  func.func @ranknet_kernel(%arg0: i32, %arg1: memref<8x16xf32, #tpu.memory_space<vmem>>, %arg2: memref<16x128xbf16, #tpu.memory_space<vmem>>, %arg3: memref<128x128xbf16, #tpu.memory_space<vmem>>, %arg4: memref<128x128xbf16, #tpu.memory_space<vmem>>, %arg5: memref<128x128xbf16, #tpu.memory_space<vmem>>, %arg6: memref<3x128xf32, #tpu.memory_space<vmem>>, %arg7: memref<1x128xf32, #tpu.memory_space<vmem>>, %arg8: memref<8x4xf32, #tpu.memory_space<vmem>>) attributes {dimension_semantics = [#tpu.dimension_semantics<parallel>], iteration_bounds = array<i64: 2>, scalar_prefetch = 0 : i64, scratch_operands = 0 : i64, tpu.core_type = #tpu.core_type<tc>, window_params = [{transform_indices = @transform_0, window_bounds = array<i64: 8, 16>}, {pipeline_mode = #tpu.pipeline_mode<synchronous>, transform_indices = @transform_1, window_bounds = array<i64: 16, 128>}, {pipeline_mode = #tpu.pipeline_mode<synchronous>, transform_indices = @transform_2, window_bounds = array<i64: 128, 128>}, {pipeline_mode = #tpu.pipeline_mode<synchronous>, transform_indices = @transform_3, window_bounds = array<i64: 128, 128>}, {pipeline_mode = #tpu.pipeline_mode<synchronous>, transform_indices = @transform_4, window_bounds = array<i64: 128, 128>}, {pipeline_mode = #tpu.pipeline_mode<synchronous>, transform_indices = @transform_5, window_bounds = array<i64: 3, 128>}, {pipeline_mode = #tpu.pipeline_mode<synchronous>, transform_indices = @transform_6, window_bounds = array<i64: 1, 128>}, {transform_indices = @transform_7, window_bounds = array<i64: 8, 4>}]} {
    %c0 = arith.constant 0 : index
    %c0_0 = arith.constant 0 : index
    %0 = vector.load %arg1[%c0, %c0_0] : memref<8x16xf32, #tpu.memory_space<vmem>>, vector<8x16xf32>
    %1 = arith.truncf %0 : vector<8x16xf32> to vector<8x16xbf16>
    %c0_1 = arith.constant 0 : index
    %c0_2 = arith.constant 0 : index
    %2 = vector.load %arg2[%c0_1, %c0_2] : memref<16x128xbf16, #tpu.memory_space<vmem>>, vector<16x128xbf16>
    %cst = arith.constant dense<0.000000e+00> : vector<8x128xf32>
    %3 = tpu.matmul %1, %2, %cst {dimension_numbers = #tpu.dot_dimension_numbers<[1], [0], [0], [1], [0, 0, 1, 1], [], []>} : vector<8x16xbf16>, vector<16x128xbf16>, vector<8x128xf32> -> vector<8x128xf32>
    %c0_3 = arith.constant 0 : index
    %c0_4 = arith.constant 0 : index
    %4 = vector.load %arg6[%c0_3, %c0_4] : memref<3x128xf32, #tpu.memory_space<vmem>>, vector<1x128xf32>
    %5 = vector.broadcast %4 : vector<1x128xf32> to vector<8x128xf32>
    %6 = arith.addf %3, %5 : vector<8x128xf32>
    %cst_5 = arith.constant 0.000000e+00 : f32
    %7 = vector.broadcast %cst_5 : f32 to vector<8x128xf32>
    %8 = arith.cmpf oge, %6, %7 : vector<8x128xf32>
    %cst_6 = arith.constant 2.000000e-01 : f32
    %9 = vector.broadcast %cst_6 : f32 to vector<8x128xf32>
    %10 = arith.mulf %9, %6 : vector<8x128xf32>
    %11 = arith.select %8, %6, %10 : vector<8x128xi1>, vector<8x128xf32>
    %12 = arith.truncf %11 : vector<8x128xf32> to vector<8x128xbf16>
    %c0_7 = arith.constant 0 : index
    %c0_8 = arith.constant 0 : index
    %13 = vector.load %arg3[%c0_7, %c0_8] : memref<128x128xbf16, #tpu.memory_space<vmem>>, vector<128x128xbf16>
    %cst_9 = arith.constant dense<0.000000e+00> : vector<8x128xf32>
    %14 = tpu.matmul %12, %13, %cst_9 {dimension_numbers = #tpu.dot_dimension_numbers<[1], [0], [0], [1], [0, 0, 1, 1], [], []>} : vector<8x128xbf16>, vector<128x128xbf16>, vector<8x128xf32> -> vector<8x128xf32>
    %c1 = arith.constant 1 : index
    %c0_10 = arith.constant 0 : index
    %15 = vector.load %arg6[%c1, %c0_10] : memref<3x128xf32, #tpu.memory_space<vmem>>, vector<1x128xf32>
    %16 = vector.broadcast %15 : vector<1x128xf32> to vector<8x128xf32>
    %17 = arith.addf %14, %16 : vector<8x128xf32>
    %cst_11 = arith.constant 0.000000e+00 : f32
    %18 = vector.broadcast %cst_11 : f32 to vector<8x128xf32>
    %19 = arith.cmpf oge, %17, %18 : vector<8x128xf32>
    %cst_12 = arith.constant 2.000000e-01 : f32
    %20 = vector.broadcast %cst_12 : f32 to vector<8x128xf32>
    %21 = arith.mulf %20, %17 : vector<8x128xf32>
    %22 = arith.select %19, %17, %21 : vector<8x128xi1>, vector<8x128xf32>
    %23 = arith.truncf %22 : vector<8x128xf32> to vector<8x128xbf16>
    %c0_13 = arith.constant 0 : index
    %c0_14 = arith.constant 0 : index
    %24 = vector.load %arg4[%c0_13, %c0_14] : memref<128x128xbf16, #tpu.memory_space<vmem>>, vector<128x128xbf16>
    %cst_15 = arith.constant dense<0.000000e+00> : vector<8x128xf32>
    %25 = tpu.matmul %23, %24, %cst_15 {dimension_numbers = #tpu.dot_dimension_numbers<[1], [0], [0], [1], [0, 0, 1, 1], [], []>} : vector<8x128xbf16>, vector<128x128xbf16>, vector<8x128xf32> -> vector<8x128xf32>
    %c2 = arith.constant 2 : index
    %c0_16 = arith.constant 0 : index
    %26 = vector.load %arg6[%c2, %c0_16] : memref<3x128xf32, #tpu.memory_space<vmem>>, vector<1x128xf32>
    %27 = vector.broadcast %26 : vector<1x128xf32> to vector<8x128xf32>
    %28 = arith.addf %25, %27 : vector<8x128xf32>
    %cst_17 = arith.constant 0.000000e+00 : f32
    %29 = vector.broadcast %cst_17 : f32 to vector<8x128xf32>
    %30 = arith.cmpf oge, %28, %29 : vector<8x128xf32>
    %cst_18 = arith.constant 2.000000e-01 : f32
    %31 = vector.broadcast %cst_18 : f32 to vector<8x128xf32>
    %32 = arith.mulf %31, %28 : vector<8x128xf32>
    %33 = arith.select %30, %28, %32 : vector<8x128xi1>, vector<8x128xf32>
    %34 = arith.truncf %33 : vector<8x128xf32> to vector<8x128xbf16>
    %c0_19 = arith.constant 0 : index
    %c0_20 = arith.constant 0 : index
    %35 = vector.load %arg5[%c0_19, %c0_20] : memref<128x128xbf16, #tpu.memory_space<vmem>>, vector<128x128xbf16>
    %cst_21 = arith.constant dense<0.000000e+00> : vector<8x128xf32>
    %36 = tpu.matmul %34, %35, %cst_21 {dimension_numbers = #tpu.dot_dimension_numbers<[1], [0], [0], [1], [0, 0, 1, 1], [], []>} : vector<8x128xbf16>, vector<128x128xbf16>, vector<8x128xf32> -> vector<8x128xf32>
    %c0_22 = arith.constant 0 : index
    %c0_23 = arith.constant 0 : index
    %37 = vector.load %arg7[%c0_22, %c0_23] : memref<1x128xf32, #tpu.memory_space<vmem>>, vector<1x128xf32>
    %38 = vector.broadcast %37 : vector<1x128xf32> to vector<8x128xf32>
    %39 = arith.addf %36, %38 : vector<8x128xf32>
    %40 = vector.extract_strided_slice %39 {offsets = [0, 0], sizes = [8, 4], strides = [1, 1]} : vector<8x128xf32> to vector<8x4xf32>
    %c0_24 = arith.constant 0 : index
    %c0_25 = arith.constant 0 : index
    %41 = vector.load %arg8[%c0_24, %c0_25] : memref<8x4xf32, #tpu.memory_space<vmem>>, vector<8x4xf32>
    tpu.vector_store %arg8[%c0_24, %c0_25], %40 {strides = array<i32>} : memref<8x4xf32, #tpu.memory_space<vmem>>, vector<8x4xf32>,
    return
  }
  func.func @transform_0(%arg0: i32) -> (i32, i32) {
    %c0_i32 = arith.constant 0 : i32
    %c0_i32_0 = arith.constant 0 : i32
    return %arg0, %c0_i32 : i32, i32
  }
  func.func @transform_1(%arg0: i32) -> (i32, i32) {
    %c0_i32 = arith.constant 0 : i32
    %c0_i32_0 = arith.constant 0 : i32
    %c0_i32_1 = arith.constant 0 : i32
    return %c0_i32, %c0_i32_0 : i32, i32
  }
  func.func @transform_2(%arg0: i32) -> (i32, i32) {
    %c0_i32 = arith.constant 0 : i32
    %c0_i32_0 = arith.constant 0 : i32
    %c0_i32_1 = arith.constant 0 : i32
    return %c0_i32, %c0_i32_0 : i32, i32
  }
  func.func @transform_3(%arg0: i32) -> (i32, i32) {
    %c0_i32 = arith.constant 0 : i32
    %c0_i32_0 = arith.constant 0 : i32
    %c0_i32_1 = arith.constant 0 : i32
    return %c0_i32, %c0_i32_0 : i32, i32
  }
  func.func @transform_4(%arg0: i32) -> (i32, i32) {
    %c0_i32 = arith.constant 0 : i32
    %c0_i32_0 = arith.constant 0 : i32
    %c0_i32_1 = arith.constant 0 : i32
    return %c0_i32, %c0_i32_0 : i32, i32
  }
  func.func @transform_5(%arg0: i32) -> (i32, i32) {
    %c0_i32 = arith.constant 0 : i32
    %c0_i32_0 = arith.constant 0 : i32
    %c0_i32_1 = arith.constant 0 : i32
    return %c0_i32, %c0_i32_0 : i32, i32
  }
  func.func @transform_6(%arg0: i32) -> (i32, i32) {
    %c0_i32 = arith.constant 0 : i32
    %c0_i32_0 = arith.constant 0 : i32
    %c0_i32_1 = arith.constant 0 : i32
    return %c0_i32, %c0_i32_0 : i32, i32
  }
  func.func @transform_7(%arg0: i32) -> (i32, i32) {
    %c0_i32 = arith.constant 0 : i32
    %c0_i32_0 = arith.constant 0 : i32
    return %arg0, %c0_i32 : i32, i32
  }
}

module attributes {stable_mosaic.version = 11 : i64} {
  func.func @ranknet_kernel(%arg0: i32, %arg1: memref<8x16xf32, #tpu.memory_space<vmem>>, %arg2: memref<16x128xbf16, #tpu.memory_space<vmem>>, %arg3: memref<128x128xbf16, #tpu.memory_space<vmem>>, %arg4: memref<128x128xbf16, #tpu.memory_space<vmem>>, %arg5: memref<128x128xbf16, #tpu.memory_space<vmem>>, %arg6: memref<3x128xf32, #tpu.memory_space<vmem>>, %arg7: memref<1x128xf32, #tpu.memory_space<vmem>>, %arg8: memref<8x4xf32, #tpu.memory_space<vmem>>) attributes {dimension_semantics = [#tpu.dimension_semantics<parallel>], iteration_bounds = array<i64: 2>, scalar_prefetch = 0 : i64, scratch_operands = 0 : i64, tpu.core_type = #tpu.core_type<tc>, window_params = [{transform_indices = @transform_0, window_bounds = array<i64: 8, 16>}, {pipeline_mode = #tpu.pipeline_mode<synchronous>, transform_indices = @transform_1, window_bounds = array<i64: 16, 128>}, {pipeline_mode = #tpu.pipeline_mode<synchronous>, transform_indices = @transform_2, window_bounds = array<i64: 128, 128>}, {pipeline_mode = #tpu.pipeline_mode<synchronous>, transform_indices = @transform_3, window_bounds = array<i64: 128, 128>}, {pipeline_mode = #tpu.pipeline_mode<synchronous>, transform_indices = @transform_4, window_bounds = array<i64: 128, 128>}, {pipeline_mode = #tpu.pipeline_mode<synchronous>, transform_indices = @transform_5, window_bounds = array<i64: 3, 128>}, {pipeline_mode = #tpu.pipeline_mode<synchronous>, transform_indices = @transform_6, window_bounds = array<i64: 1, 128>}, {transform_indices = @transform_7, window_bounds = array<i64: 8, 4>}]} {
    %c0 = arith.constant 0 : index
    %c0_0 = arith.constant 0 : index
    %0 = vector.load %arg1[%c0, %c0_0] : memref<8x16xf32, #tpu.memory_space<vmem>>, vector<8x16xf32>
    %1 = arith.truncf %0 : vector<8x16xf32> to vector<8x16xbf16>
    %c0_1 = arith.constant 0 : index
    %c0_2 = arith.constant 0 : index
    %2 = vector.load %arg2[%c0_1, %c0_2] : memref<16x128xbf16, #tpu.memory_space<vmem>>, vector<16x128xbf16>
    %cst = arith.constant dense<0.000000e+00> : vector<8x128xf32>
    %3 = tpu.matmul %1, %2, %cst {dimension_numbers = #tpu.dot_dimension_numbers<[1], [0], [0], [1], [0, 0, 1, 1], [], []>} : vector<8x16xbf16>, vector<16x128xbf16>, vector<8x128xf32> -> vector<8x128xf32>
    %c0_3 = arith.constant 0 : index
    %c0_4 = arith.constant 0 : index
    %4 = vector.load %arg6[%c0_3, %c0_4] : memref<3x128xf32, #tpu.memory_space<vmem>>, vector<1x128xf32>
    %5 = vector.broadcast %4 : vector<1x128xf32> to vector<8x128xf32>
    %6 = arith.addf %3, %5 : vector<8x128xf32>
    %cst_5 = arith.constant 0.000000e+00 : f32
    %7 = vector.broadcast %cst_5 : f32 to vector<8x128xf32>
    %8 = arith.cmpf oge, %6, %7 : vector<8x128xf32>
    %cst_6 = arith.constant 2.000000e-01 : f32
    %9 = vector.broadcast %cst_6 : f32 to vector<8x128xf32>
    %10 = arith.mulf %9, %6 : vector<8x128xf32>
    %11 = arith.select %8, %6, %10 : vector<8x128xi1>, vector<8x128xf32>
    %12 = arith.truncf %11 : vector<8x128xf32> to vector<8x128xbf16>
    %c0_7 = arith.constant 0 : index
    %c0_8 = arith.constant 0 : index
    %13 = vector.load %arg3[%c0_7, %c0_8] : memref<128x128xbf16, #tpu.memory_space<vmem>>, vector<128x128xbf16>
    %cst_9 = arith.constant dense<0.000000e+00> : vector<8x128xf32>
    %14 = tpu.matmul %12, %13, %cst_9 {dimension_numbers = #tpu.dot_dimension_numbers<[1], [0], [0], [1], [0, 0, 1, 1], [], []>} : vector<8x128xbf16>, vector<128x128xbf16>, vector<8x128xf32> -> vector<8x128xf32>
    %c1 = arith.constant 1 : index
    %c0_10 = arith.constant 0 : index
    %15 = vector.load %arg6[%c1, %c0_10] : memref<3x128xf32, #tpu.memory_space<vmem>>, vector<1x128xf32>
    %16 = vector.broadcast %15 : vector<1x128xf32> to vector<8x128xf32>
    %17 = arith.addf %14, %16 : vector<8x128xf32>
    %cst_11 = arith.constant 0.000000e+00 : f32
    %18 = vector.broadcast %cst_11 : f32 to vector<8x128xf32>
    %19 = arith.cmpf oge, %17, %18 : vector<8x128xf32>
    %cst_12 = arith.constant 2.000000e-01 : f32
    %20 = vector.broadcast %cst_12 : f32 to vector<8x128xf32>
    %21 = arith.mulf %20, %17 : vector<8x128xf32>
    %22 = arith.select %19, %17, %21 : vector<8x128xi1>, vector<8x128xf32>
    %23 = arith.truncf %22 : vector<8x128xf32> to vector<8x128xbf16>
    %c0_13 = arith.constant 0 : index
    %c0_14 = arith.constant 0 : index
    %24 = vector.load %arg4[%c0_13, %c0_14] : memref<128x128xbf16, #tpu.memory_space<vmem>>, vector<128x128xbf16>
    %cst_15 = arith.constant dense<0.000000e+00> : vector<8x128xf32>
    %25 = tpu.matmul %23, %24, %cst_15 {dimension_numbers = #tpu.dot_dimension_numbers<[1], [0], [0], [1], [0, 0, 1, 1], [], []>} : vector<8x128xbf16>, vector<128x128xbf16>, vector<8x128xf32> -> vector<8x128xf32>
    %c2 = arith.constant 2 : index
    %c0_16 = arith.constant 0 : index
    %26 = vector.load %arg6[%c2, %c0_16] : memref<3x128xf32, #tpu.memory_space<vmem>>, vector<1x128xf32>
    %27 = vector.broadcast %26 : vector<1x128xf32> to vector<8x128xf32>
    %28 = arith.addf %25, %27 : vector<8x128xf32>
    %cst_17 = arith.constant 0.000000e+00 : f32
    %29 = vector.broadcast %cst_17 : f32 to vector<8x128xf32>
    %30 = arith.cmpf oge, %28, %29 : vector<8x128xf32>
    %cst_18 = arith.constant 2.000000e-01 : f32
    %31 = vector.broadcast %cst_18 : f32 to vector<8x128xf32>
    %32 = arith.mulf %31, %28 : vector<8x128xf32>
    %33 = arith.select %30, %28, %32 : vector<8x128xi1>, vector<8x128xf32>
    %34 = arith.truncf %33 : vector<8x128xf32> to vector<8x128xbf16>
    %c0_19 = arith.constant 0 : index
    %c0_20 = arith.constant 0 : index
    %35 = vector.load %arg5[%c0_19, %c0_20] : memref<128x128xbf16, #tpu.memory_space<vmem>>, vector<128x128xbf16>
    %cst_21 = arith.constant dense<0.000000e+00> : vector<8x128xf32>
    %36 = tpu.matmul %34, %35, %cst_21 {dimension_numbers = #tpu.dot_dimension_numbers<[1], [0], [0], [1], [0, 0, 1, 1], [], []>} : vector<8x128xbf16>, vector<128x128xbf16>, vector<8x128xf32> -> vector<8x128xf32>
    %c0_22 = arith.constant 0 : index
    %c0_23 = arith.constant 0 : index
    %37 = vector.load %arg7[%c0_22, %c0_23] : memref<1x128xf32, #tpu.memory_space<vmem>>, vector<1x128xf32>
    %38 = vector.broadcast %37 : vector<1x128xf32> to vector<8x128xf32>
    %39 = arith.addf %36, %38 : vector<8x128xf32>
    %40 = vector.extract_strided_slice %39 {offsets = [0, 0], sizes = [8, 4], strides = [1, 1]} : vector<8x128xf32> to vector<8x4xf32>
    %c0_24 = arith.constant 0 : index
    %c0_25 = arith.constant 0 : index
    %41 = vector.load %arg8[%c0_24, %c0_25] : memref<8x4xf32, #tpu.memory_space<vmem>>, vector<8x4xf32>
    tpu.vector_store %arg8[%c0_24, %c0_25], %40 {strides = array<i32>} : memref<8x4xf32, #tpu.memory_space<vmem>>, vector<8x4xf32>,
    return
  }
  func.func @transform_0(%arg0: i32) -> (i32, i32) {
    %c0_i32 = arith.constant 0 : i32
    %c0_i32_0 = arith.constant 0 : i32
    return %arg0, %c0_i32 : i32, i32
  }
  func.func @transform_1(%arg0: i32) -> (i32, i32) {
    %c0_i32 = arith.constant 0 : i32
    %c0_i32_0 = arith.constant 0 : i32
    %c0_i32_1 = arith.constant 0 : i32
    return %c0_i32, %c0_i32_0 : i32, i32
  }
  func.func @transform_2(%arg0: i32) -> (i32, i32) {
    %c0_i32 = arith.constant 0 : i32
    %c0_i32_0 = arith.constant 0 : i32
    %c0_i32_1 = arith.constant 0 : i32
    return %c0_i32, %c0_i32_0 : i32, i32
  }
  func.func @transform_3(%arg0: i32) -> (i32, i32) {
    %c0_i32 = arith.constant 0 : i32
    %c0_i32_0 = arith.constant 0 : i32
    %c0_i32_1 = arith.constant 0 : i32
    return %c0_i32, %c0_i32_0 : i32, i32
  }
  func.func @transform_4(%arg0: i32) -> (i32, i32) {
    %c0_i32 = arith.constant 0 : i32
    %c0_i32_0 = arith.constant 0 : i32
    %c0_i32_1 = arith.constant 0 : i32
    return %c0_i32, %c0_i32_0 : i32, i32
  }
  func.func @transform_5(%arg0: i32) -> (i32, i32) {
    %c0_i32 = arith.constant 0 : i32
    %c0_i32_0 = arith.constant 0 : i32
    %c0_i32_1 = arith.constant 0 : i32
    return %c0_i32, %c0_i32_0 : i32, i32
  }
  func.func @transform_6(%arg0: i32) -> (i32, i32) {
    %c0_i32 = arith.constant 0 : i32
    %c0_i32_0 = arith.constant 0 : i32
    %c0_i32_1 = arith.constant 0 : i32
    return %c0_i32, %c0_i32_0 : i32, i32
  }
  func.func @transform_7(%arg0: i32) -> (i32, i32) {
    %c0_i32 = arith.constant 0 : i32
    %c0_i32_0 = arith.constant 0 : i32
    return %arg0, %c0_i32 : i32, i32
  }
}

</mosaic_0001>

<bundles_post_ra>
// kernel: tpu_custom_call.1
= control target key start
LH: loop header
LB: loop body
LE: loop exit
PB: predicated region body
PF: predicated region fallthrough
CT: control target
= control target key end

     0   :  { %12 = vsyncpa [#allocation3], 0  ;;  %s1361_s0 = inlined_call_operand.hbm [shape: f32[16,16], index: 0, kind: input, shape index: {}]   ;;  %s1362_s1 = inlined_call_operand.hbm [shape: bf16[16,128], index: 1, kind: input, shape index: {}]   ;;  %s1363_s2 = inlined_call_operand.hbm [shape: bf16[128,128], index: 2, kind: input, shape index: {}]   ;;  %s1364_s3 = inlined_call_operand.hbm [shape: bf16[128,128], index: 3, kind: input, shape index: {}]   ;;  %s1365_s4 = inlined_call_operand.hbm [shape: bf16[128,128], index: 4, kind: input, shape index: {}]   ;;  %s1366_s5 = inlined_call_operand.vmem [shape: f32[3,128], index: 5, kind: input, shape index: {}]   ;;  %s1367_s6 = inlined_call_operand.vmem [shape: f32[1,128], index: 6, kind: input, shape index: {}]   ;;  %s1368_s7 = inlined_call_operand.vmem [shape: f32[16,4], index: 7, kind: output, shape index: {}]  }
   0x1   :  { %14 = vsyncpa [#allocation3 + $0x1], 0 }
   0x2   :  { %15 = vsyncpa [#allocation5], 0 }
   0x3   :  { %16 = vsyncpa [#allocation8], 0  ;;  %s1218_s24 = smov 0   ;;  %s1220_s25 = smov 0  }
   0x4   :  { %s1222_s26 = smov 0   ;;  %s1224_s27 = smov 0  }
   0x5 LB: > { %s216_s30 = sshll.u32 %s1362_s1, 4  ;;  %s1242_s8 = sadd.s32 4294967295, %s1170_s27   ;;  %s1170_s27 = sphi %s1224_s27, %s1376_s27   ;;  %s1166_s26 = sphi %s1222_s26, %s1375_s26   ;;  %s1162_s25 = sphi %s1220_s25, %s1374_s25   ;;  %s1158_s24 = sphi %s1218_s24, %s1373_s24   ;;  %s217_s30 = int_to_ptr.hbm [resolvable:$true] %s216_s30 }
   0x6   : > { %p749_p0 = scmp.ge.s32.totalorder %s1170_s27, 1  ;;  %p43_p1 = scmp.eq.s32.totalorder %s1242_s8, 0 }
   0x7   : > { %p205_p2 = scmp.lt.s32.totalorder %s1170_s27, 3  ;;  %s1172_s10 = smov [#allocation4]  }
   0x8   : > { %s218_s11 = sshll.u32 %s1172_s10, 4  ;;  %s244_s14 = sshll.u32 %s1364_s3, 4  ;;  %s219_s11 = int_to_ptr.vmem [resolvable:$true] %s218_s11  ;;  %s245_s14 = int_to_ptr.hbm [resolvable:$true] %s244_s14 }
   0x9   : > { %p1247_p3 = pnand %p749_p0, %p205_p2  ;;  %s230_s18 = sshll.u32 %s1363_s2, 4  ;;  %s231_s18 = int_to_ptr.hbm [resolvable:$true] %s230_s18 }
   0xa   : > { %s1173_s19 = smov [#allocation7]   ;;  %s1174_s21 = smov 64  }
   0xb   : > { %p910_p4 = pneg %p1247_p3  ;;  %s246_s20 = sshll.u32 %s1173_s19, 4  ;;  %s247_s20 = int_to_ptr.vmem [resolvable:$true] %s246_s20 }
   0xc   : > { %s1175_s22 = smov 4   ;;  %s258_s29 = sshll.u32 %s1365_s4, 4  ;;  %s259_s29 = int_to_ptr.hbm [resolvable:$true] %s258_s29 }
   0xd   : > { %p1258_p5 = pnand %p910_p4, %p43_p1  ;;  %s1176_s10 = smov [#allocation6]  }
   0xe   : > { %s232_s12 = sshll.u32 %s1176_s10, 4  ;;  %s1277_s13 = sadd.s32 1, %s1170_s27   ;;  %s233_s12 = int_to_ptr.vmem [resolvable:$true] %s232_s12 }
   0xf   : > { %913 = dma.hbm_to_vmem [thread:$0]  (!%p1258_p5), %s217_s30, 128, %s219_s11, [#allocation5], %s1174_s21, %s1174_s21, %s1175_s22  }
  0x10   : > { %919 = dma.hbm_to_vmem [thread:$0]  (!%p1258_p5), %s245_s14, 1024, %s247_s20, [#allocation8], %s1174_s21, %s1174_s21, %s1175_s22  }
  0x11   : > { %916 = dma.hbm_to_vmem [thread:$0]  (!%p1258_p5), %s231_s18, 1024, %s233_s12, [#allocation5], %s1174_s21, %s1174_s21, %s1175_s22  }
  0x12   : > { %s1177_s30 = smov [#allocation9]   ;;  %s26_s14 = ssub.s32 %s1170_s27, %s1277_s13 }
  0x13   : > { %s260_s11 = sshll.u32 %s1177_s30, 4  ;;  %s29_s16 = sadd.s32 1, %s1166_s26  ;;  %s261_s11 = int_to_ptr.vmem [resolvable:$true] %s260_s11 }
  0x14   : > { %922 = dma.hbm_to_vmem [thread:$0]  (!%p1258_p5), %s259_s29, 1024, %s261_s11, [#allocation8], %s1174_s21, %s1174_s21, %s1175_s22  }
  0x15   : > { %p27_p6 = scmp.eq.s32.totalorder %s26_s14, 0  ;;  %p36_p7 = scmp.ne.s32.totalorder %s1166_s26, %s1162_s25 }
  0x16   : > { %p37_p8 = scmp.eq.s32.totalorder %s1170_s27, 0  ;;  %p42_p9 = scmp.ne.s32.totalorder %s1162_s25, %s1158_s24 }
  0x17   : > { %s1288_s17 = scalar_select %p27_p6, %s1166_s26, %s29_s16  }
  0x18   : > { %p1292_p10 = por %p43_p1, %p42_p9  ;;  %p931_p11 = scmp.lt.s32.totalorder %s1170_s27, 2 }
  0x19   : > { %s280_s19 = sand.u32 1, %s1166_s26   ;;  %s756_s15 = sshll.u32 %s1170_s27, 3 }
  0x1a   : > { %p38_p12 = por %p37_p8, %p36_p7  ;;  %s755_s20 = sshll.u32 %s280_s19, 3 }
  0x1b   : > { %s288_s23 = scalar_lea.hbm %s1361_s0, %s756_s15  ;;  %s284_s29 = scalar_lea.vmem [#allocation2], %s755_s20 }
  0x1c   : > { %s290_s28 = sshll.u32 %s288_s23, 4  ;;  %s292_s10 = sshll.u32 %s284_s29, 4  ;;  %s291_s28 = int_to_ptr.hbm [resolvable:$true] %s290_s28  ;;  %s293_s10 = int_to_ptr.vmem [resolvable:$true] %s292_s10 }
  0x1d   : > { %p1302_p13 = pnand %p931_p11, %p38_p12  ;;  %s281_s12 = scalar_lea.sflag [#allocation3], %s280_s19 }
  0x1e   : > { %s1098_s30 = sshra.s32 %s291_s28, 4  ;;  %s1105_s16 = scalar_lea.hbm %s1361_s0, 16  ;;  %s1099_s30 = int_to_ptr.hbm [resolvable:$true] %s1098_s30 }
  0x1f   : > { %s1100_s27 = scalar_lea.hbm %s1099_s30, 8  ;;  %p1102_p2 = pneg %p1302_p13 }
  0x20   : > { %p1101_p0 = scmp.ne.s32.totalorder %s1099_s30, %s1100_s27  ;;  %p1106_p6 = scmp.lt.s32.totalorder %s1099_s30, %s1361_s0 }
  0x21   : > { %p1107_p7 = scmp.lt.s32.totalorder %s1105_s16, %s1100_s27 }
  0x22   : > { %p1103_p4 = pnand %p1102_p2, %p1101_p0 }
  0x23   : > { %p1108_p8 = por %p1107_p7, %p1106_p6 }
  0x24   : > { %p1104_p5 = pneg %p1103_p4 }
  0x26   : > { %p1109_p9 = pnand %p1108_p8, %p1104_p5 }
  0x28   : > { %1112 = shalt.err (!%p1109_p9)
}
  0x29   : > { %926 = dma.hbm_to_vmem [thread:$0]  (!%p1302_p13), %s291_s28, 128, %s293_s10, %s281_s12  }
  0x2a   : > { %301 = sbr.rel (%p1247_p3) target bundleno = 601 (0x259), region = 48  ;;  %s303_s19 = sand.u32 (!%p1247_p3), 1, %s1162_s25  }
  0x2b   : > { %s758_s21 = sshll.u32 (!%p1247_p3), %s303_s19, 3  ;;  %s304_s22 = scalar_lea.sflag (!%p1247_p3), [#allocation3], %s303_s19 }
  0x2c   : > { %s307_s23 = scalar_lea.vmem (!%p1247_p3), [#allocation2], %s758_s21 }
  0x2f   : > { %1145 = dma.done.wait (%p1292_p10), %s304_s22, 128  }
  0x30   : > { %1147 = vsyncadd (%p1292_p10), %s304_s22, 4294967168 }
  0x31   : > { %1149 = dma.done.wait (%p43_p1), [#allocation5], 1152  }
  0x32   : > { %1151 = vsyncadd (%p43_p1), [#allocation5], 4294966144 }
  0x33   : > { %1153 = dma.done.wait (%p43_p1), [#allocation8], 2048  }
  0x34   : > { %1155 = vsyncadd (%p43_p1), [#allocation8], 4294965248  ;;  %v867_v0 = vld [vmem:[#allocation4] sm:$0xff]  ;;  %v363_v1 = vld [vmem:[%s307_s23] sm:$0xff]  ;;  %vm375_vm0 = vcmask 130048   ;;  %p358_p1 = scmp.lt.s32.totalorder %s1242_s8, 1 }
  0x35   : > { %v875_v2 = vld [vmem:[#allocation6 + $0x38] sm:$0xff]  ;;  %v364_v3 = vpack.c.bf16 %v363_v1, %v363_v1  ;;  %386 = vmatpush.bf16.msra.mxu0 %v867_v0  ;;  %v874_v4 = vld [vmem:[#allocation6 + $0x30] sm:$0xff]  ;;  %v873_v5 = vld [vmem:[#allocation6 + $0x28] sm:$0xff]  ;;  %vm643_vm4 = vcmask 31744  }
  0x36   : > { %462 = vmatpush.bf16.msra.mxu1 %v875_v2  ;;  %v872_v6 = vld [vmem:[#allocation6 + $0x20] sm:$0xff]  ;;  %v871_v7 = vld [vmem:[#allocation6 + $0x18] sm:$0xff]  ;;  %v870_v8 = vld [vmem:[#allocation6 + $0x10] sm:$0xff]  ;;  %s1378_s8 = smov (!%p358_p1, %s1242_s8), 1 }
  0x37   : > { %v869_v9 = vld [vmem:[#allocation6 + $0x8] sm:$0xff]  ;;  %v868_v10 = vld [vmem:[#allocation6] sm:$0xff]  ;;  %v883_v11 = vld [vmem:[#allocation7 + $0x38] sm:$0xff]  ;;  %s763_s12 = sshll.u32 %s1378_s8, 3 }
  0x38   : > { %768 = vmatmul.msk.bf16.vlgmr.msra.gmra.mxu0 %vm375_vm0, %v364_v3  ;;  %545 = vmatpush.bf16.msra.mxu2 %v883_v11  ;;  %v882_v12 = vld [vmem:[#allocation7 + $0x30] sm:$0xff]  ;;  %v881_v13 = vld [vmem:[#allocation7 + $0x28] sm:$0xff]  ;;  %v880_v14 = vld [vmem:[#allocation7 + $0x20] sm:$0xff]  ;;  %s361_s16 = scalar_lea.vmem %s1368_s7, %s763_s12 }
  0x39   : > { %v879_v15 = vld [vmem:[#allocation7 + $0x18] sm:$0xff]  ;;  %v878_v16 = vld [vmem:[#allocation7 + $0x10] sm:$0xff]  ;;  %v974_v17 = vld [vmem:[%s1366_s5] ss:$0 sm:$0xff] }
  0x3a   : > { %463 = vmatpush.bf16.msra.mxu1 %v874_v4  ;;  %v877_v24 = vld [vmem:[#allocation7 + $0x8] sm:$0xff]  ;;  %v876_v25 = vld [vmem:[#allocation7] sm:$0xff]  ;;  %v891_v26 = vld [vmem:[#allocation9 + $0x38] sm:$0xff] }
  0x3b   : > { %630 = vmatpush.bf16.msra.mxu3 %v891_v26  ;;  %v890_v27 = vld [vmem:[#allocation9 + $0x30] sm:$0xff]  ;;  %v889_v28 = vld [vmem:[#allocation9 + $0x28] sm:$0xff]  ;;  %v888_v29 = vld [vmem:[#allocation9 + $0x20] sm:$0xff] }
  0x3c   : > { %546 = vmatpush.bf16.msra.mxu2 %v882_v12  ;;  %v887_v30 = vld [vmem:[#allocation9 + $0x18] sm:$0xff]  ;;  %v886_v31 = vld [vmem:[#allocation9 + $0x10] sm:$0xff]  ;;  %v975_v32 = vld [vmem:[%s1366_s5 + $0x1] ss:$0 sm:$0xff] }
  0x3d   : > { %v885_v39 = vld [vmem:[#allocation9 + $0x8] sm:$0xff]  ;;  %v884_v40 = vld [vmem:[#allocation9] sm:$0xff] }
  0x3e   : > { %464 = vmatpush.bf16.msra.mxu1 %v873_v5  ;;  %v976_v41 = vld [vmem:[%s1366_s5 + $0x2] ss:$0 sm:$0xff]  ;;  %v977_v48 = vld [vmem:[%s1367_s6] ss:$0 sm:$0xff] }
  0x3f   : > { %631 = vmatpush.bf16.msra.mxu3 %v890_v27 }
  0x40   : > { %547 = vmatpush.bf16.msra.mxu2 %v881_v13 }
  0x42   : > { %465 = vmatpush.bf16.msra.mxu1 %v872_v6 }
  0x43   : > { %632 = vmatpush.bf16.msra.mxu3 %v889_v28 }
  0x44   : > { %548 = vmatpush.bf16.msra.mxu2 %v880_v14 }
  0x46   : > { %466 = vmatpush.bf16.msra.mxu1 %v871_v7 }
  0x47   : > { %633 = vmatpush.bf16.msra.mxu3 %v888_v29 }
  0x48   : > { %549 = vmatpush.bf16.msra.mxu2 %v879_v15 }
  0x4a   : > { %467 = vmatpush.bf16.msra.mxu1 %v870_v8 }
  0x4b   : > { %634 = vmatpush.bf16.msra.mxu3 %v887_v30 }
  0x4c   : > { %550 = vmatpush.bf16.msra.mxu2 %v878_v16 }
  0x4e   : > { %468 = vmatpush.bf16.msra.mxu1 %v869_v9 }
  0x4f   : > { %635 = vmatpush.bf16.msra.mxu3 %v886_v31 }
  0x50   : > { %551 = vmatpush.bf16.msra.mxu2 %v877_v24 }
  0x52   : > { %469 = vmatpush.bf16.msra.mxu1 %v868_v10 }
  0x53   : > { %636 = vmatpush.bf16.msra.mxu3 %v885_v39 }
  0x54   : > { %552 = vmatpush.bf16.msra.mxu2 %v876_v25 }
  0x57   : > { %637 = vmatpush.bf16.msra.mxu3 %v884_v40 }
  0xb5   : > { %v388_v18 = vpop.f32.mrf.mxu0 }
  0xb6   : > { %v389_v19 = vadd.f32 %v974_v17, %v388_v18 }
  0xb8   : > { %v393_v20 = vmul.f32 0.2, %v389_v19  ;;  %vm392_vm1 = vcmp.ge.f32.partialorder %v389_v19, 0.0 }
  0xba   : > { %v394_v21 = vsel %vm392_vm1, %v389_v19, %v393_v20 }
  0xbb   : > { %v395_v22 = vpack.c.bf16 %v394_v21, %v394_v21 }
  0xbd   : > { %v390_v23 = vpop.f32.mrf.mxu0  ;;  %470 = vmatmul.bf16.vlgmr.msra.gmra.mxu1 %v395_v22 }
 0x13a   : > { %v471_v33 = vpop.f32.mrf.mxu1 }
 0x13b   : > { %v472_v34 = vadd.f32 %v975_v32, %v471_v33 }
 0x13d   : > { %v476_v35 = vmul.f32 0.2, %v472_v34  ;;  %vm475_vm2 = vcmp.ge.f32.partialorder %v472_v34, 0.0 }
 0x13f   : > { %v477_v36 = vsel %vm475_vm2, %v472_v34, %v476_v35 }
 0x140   : > { %v478_v37 = vpack.c.bf16 %v477_v36, %v477_v36 }
 0x142   : > { %v473_v38 = vpop.f32.mrf.mxu1  ;;  %553 = vmatmul.bf16.vlgmr.msra.gmra.mxu2 %v478_v37 }
 0x1c5   : > { %v554_v42 = vpop.f32.mrf.mxu2 }
 0x1c6   : > { %v555_v43 = vadd.f32 %v976_v41, %v554_v42 }
 0x1c8   : > { %v559_v44 = vmul.f32 0.2, %v555_v43  ;;  %vm558_vm3 = vcmp.ge.f32.partialorder %v555_v43, 0.0 }
 0x1ca   : > { %v560_v45 = vsel %vm558_vm3, %v555_v43, %v559_v44 }
 0x1cb   : > { %v561_v46 = vpack.c.bf16 %v560_v45, %v560_v45 }
 0x1cd   : > { %v556_v47 = vpop.f32.mrf.mxu2  ;;  %638 = vmatmul.bf16.vlgmr.msra.gmra.mxu3 %v561_v46 }
 0x250   : > { %v639_v49 = vpop.f32.mrf.mxu3 }
 0x251   : > { %v640_v50 = vadd.f32 %v977_v48, %v639_v49 }
 0x253   : > { %644 = vst.msk [vmem:[%s361_s16] sm:$0xff] %vm643_vm4, %v640_v50 }
 0x258   : > { %v641_v51 = vpop.f32.mrf.mxu3 }
 0x259 PF: > { %p19_p3 = scmp.ge.s32.totalorder %s1277_s13, 4   ;;  %s1373_s24 = smov %s1162_s25 }
 0x25a   : > { %s1374_s25 = smov %s1166_s26  ;;  %s1375_s26 = smov %s1288_s17 }
 0x25b   : > { %s1376_s27 = smov %s1277_s13  ;;  %21 = sbr.rel (!%p19_p3) target bundleno = 5 (0x5), region = 104 }
 0x260   :  { %664 = vsyncpa [#allocation3], 1 }
 0x261   :  { %666 = vsyncpa [#allocation3 + $0x1], 1 }
 0x262   :  { %667 = vsyncpa [#allocation5], 1 }
 0x263   :  { %668 = vsyncpa [#allocation8], 1 }

// kernel: tpu_custom_call.1
= control target key start
LH: loop header
LB: loop body
LE: loop exit
PB: predicated region body
PF: predicated region fallthrough
CT: control target
= control target key end

     0   :  { %12 = vsyncpa [#allocation3], 0  ;;  %s1361_s0 = inlined_call_operand.hbm [shape: f32[16,16], index: 0, kind: input, shape index: {}]   ;;  %s1362_s1 = inlined_call_operand.hbm [shape: bf16[16,128], index: 1, kind: input, shape index: {}]   ;;  %s1363_s2 = inlined_call_operand.hbm [shape: bf16[128,128], index: 2, kind: input, shape index: {}]   ;;  %s1364_s3 = inlined_call_operand.hbm [shape: bf16[128,128], index: 3, kind: input, shape index: {}]   ;;  %s1365_s4 = inlined_call_operand.hbm [shape: bf16[128,128], index: 4, kind: input, shape index: {}]   ;;  %s1366_s5 = inlined_call_operand.vmem [shape: f32[3,128], index: 5, kind: input, shape index: {}]   ;;  %s1367_s6 = inlined_call_operand.vmem [shape: f32[1,128], index: 6, kind: input, shape index: {}]   ;;  %s1368_s7 = inlined_call_operand.vmem [shape: f32[16,4], index: 7, kind: output, shape index: {}]  }
   0x1   :  { %14 = vsyncpa [#allocation3 + $0x1], 0 }
   0x2   :  { %15 = vsyncpa [#allocation5], 0 }
   0x3   :  { %16 = vsyncpa [#allocation8], 0  ;;  %s1218_s24 = smov 0   ;;  %s1220_s25 = smov 0  }
   0x4   :  { %s1222_s26 = smov 0   ;;  %s1224_s27 = smov 0  }
   0x5 LB: > { %s216_s30 = sshll.u32 %s1362_s1, 4  ;;  %s1242_s8 = sadd.s32 4294967295, %s1170_s27   ;;  %s1170_s27 = sphi %s1224_s27, %s1376_s27   ;;  %s1166_s26 = sphi %s1222_s26, %s1375_s26   ;;  %s1162_s25 = sphi %s1220_s25, %s1374_s25   ;;  %s1158_s24 = sphi %s1218_s24, %s1373_s24   ;;  %s217_s30 = int_to_ptr.hbm [resolvable:$true] %s216_s30 }
   0x6   : > { %p749_p0 = scmp.ge.s32.totalorder %s1170_s27, 1  ;;  %p43_p1 = scmp.eq.s32.totalorder %s1242_s8, 0 }
   0x7   : > { %p205_p2 = scmp.lt.s32.totalorder %s1170_s27, 3  ;;  %s1172_s10 = smov [#allocation4]  }
   0x8   : > { %s218_s11 = sshll.u32 %s1172_s10, 4  ;;  %s244_s14 = sshll.u32 %s1364_s3, 4  ;;  %s219_s11 = int_to_ptr.vmem [resolvable:$true] %s218_s11  ;;  %s245_s14 = int_to_ptr.hbm [resolvable:$true] %s244_s14 }
   0x9   : > { %p1247_p3 = pnand %p749_p0, %p205_p2  ;;  %s230_s18 = sshll.u32 %s1363_s2, 4  ;;  %s231_s18 = int_to_ptr.hbm [resolvable:$true] %s230_s18 }
   0xa   : > { %s1173_s19 = smov [#allocation7]   ;;  %s1174_s21 = smov 64  }
   0xb   : > { %p910_p4 = pneg %p1247_p3  ;;  %s246_s20 = sshll.u32 %s1173_s19, 4  ;;  %s247_s20 = int_to_ptr.vmem [resolvable:$true] %s246_s20 }
   0xc   : > { %s1175_s22 = smov 4   ;;  %s258_s29 = sshll.u32 %s1365_s4, 4  ;;  %s259_s29 = int_to_ptr.hbm [resolvable:$true] %s258_s29 }
   0xd   : > { %p1258_p5 = pnand %p910_p4, %p43_p1  ;;  %s1176_s10 = smov [#allocation6]  }
   0xe   : > { %s232_s12 = sshll.u32 %s1176_s10, 4  ;;  %s1277_s13 = sadd.s32 1, %s1170_s27   ;;  %s233_s12 = int_to_ptr.vmem [resolvable:$true] %s232_s12 }
   0xf   : > { %913 = dma.hbm_to_vmem [thread:$0]  (!%p1258_p5), %s217_s30, 128, %s219_s11, [#allocation5], %s1174_s21, %s1174_s21, %s1175_s22  }
  0x10   : > { %919 = dma.hbm_to_vmem [thread:$0]  (!%p1258_p5), %s245_s14, 1024, %s247_s20, [#allocation8], %s1174_s21, %s1174_s21, %s1175_s22  }
  0x11   : > { %916 = dma.hbm_to_vmem [thread:$0]  (!%p1258_p5), %s231_s18, 1024, %s233_s12, [#allocation5], %s1174_s21, %s1174_s21, %s1175_s22  }
  0x12   : > { %s1177_s30 = smov [#allocation9]   ;;  %s26_s14 = ssub.s32 %s1170_s27, %s1277_s13 }
  0x13   : > { %s260_s11 = sshll.u32 %s1177_s30, 4  ;;  %s29_s16 = sadd.s32 1, %s1166_s26  ;;  %s261_s11 = int_to_ptr.vmem [resolvable:$true] %s260_s11 }
  0x14   : > { %922 = dma.hbm_to_vmem [thread:$0]  (!%p1258_p5), %s259_s29, 1024, %s261_s11, [#allocation8], %s1174_s21, %s1174_s21, %s1175_s22  }
  0x15   : > { %p27_p6 = scmp.eq.s32.totalorder %s26_s14, 0  ;;  %p36_p7 = scmp.ne.s32.totalorder %s1166_s26, %s1162_s25 }
  0x16   : > { %p37_p8 = scmp.eq.s32.totalorder %s1170_s27, 0  ;;  %p42_p9 = scmp.ne.s32.totalorder %s1162_s25, %s1158_s24 }
  0x17   : > { %s1288_s17 = scalar_select %p27_p6, %s1166_s26, %s29_s16  }
  0x18   : > { %p1292_p10 = por %p43_p1, %p42_p9  ;;  %p931_p11 = scmp.lt.s32.totalorder %s1170_s27, 2 }
  0x19   : > { %s280_s19 = sand.u32 1, %s1166_s26   ;;  %s756_s15 = sshll.u32 %s1170_s27, 3 }
  0x1a   : > { %p38_p12 = por %p37_p8, %p36_p7  ;;  %s755_s20 = sshll.u32 %s280_s19, 3 }
  0x1b   : > { %s288_s23 = scalar_lea.hbm %s1361_s0, %s756_s15  ;;  %s284_s29 = scalar_lea.vmem [#allocation2], %s755_s20 }
  0x1c   : > { %s290_s28 = sshll.u32 %s288_s23, 4  ;;  %s292_s10 = sshll.u32 %s284_s29, 4  ;;  %s291_s28 = int_to_ptr.hbm [resolvable:$true] %s290_s28  ;;  %s293_s10 = int_to_ptr.vmem [resolvable:$true] %s292_s10 }
  0x1d   : > { %p1302_p13 = pnand %p931_p11, %p38_p12  ;;  %s281_s12 = scalar_lea.sflag [#allocation3], %s280_s19 }
  0x1e   : > { %s1098_s30 = sshra.s32 %s291_s28, 4  ;;  %s1105_s16 = scalar_lea.hbm %s1361_s0, 16  ;;  %s1099_s30 = int_to_ptr.hbm [resolvable:$true] %s1098_s30 }
  0x1f   : > { %s1100_s27 = scalar_lea.hbm %s1099_s30, 8  ;;  %p1102_p2 = pneg %p1302_p13 }
  0x20   : > { %p1101_p0 = scmp.ne.s32.totalorder %s1099_s30, %s1100_s27  ;;  %p1106_p6 = scmp.lt.s32.totalorder %s1099_s30, %s1361_s0 }
  0x21   : > { %p1107_p7 = scmp.lt.s32.totalorder %s1105_s16, %s1100_s27 }
  0x22   : > { %p1103_p4 = pnand %p1102_p2, %p1101_p0 }
  0x23   : > { %p1108_p8 = por %p1107_p7, %p1106_p6 }
  0x24   : > { %p1104_p5 = pneg %p1103_p4 }
  0x26   : > { %p1109_p9 = pnand %p1108_p8, %p1104_p5 }
  0x28   : > { %1112 = shalt.err (!%p1109_p9)
}
  0x29   : > { %926 = dma.hbm_to_vmem [thread:$0]  (!%p1302_p13), %s291_s28, 128, %s293_s10, %s281_s12  }
  0x2a   : > { %301 = sbr.rel (%p1247_p3) target bundleno = 601 (0x259), region = 48  ;;  %s303_s19 = sand.u32 (!%p1247_p3), 1, %s1162_s25  }
  0x2b   : > { %s758_s21 = sshll.u32 (!%p1247_p3), %s303_s19, 3  ;;  %s304_s22 = scalar_lea.sflag (!%p1247_p3), [#allocation3], %s303_s19 }
  0x2c   : > { %s307_s23 = scalar_lea.vmem (!%p1247_p3), [#allocation2], %s758_s21 }
  0x2f   : > { %1145 = dma.done.wait (%p1292_p10), %s304_s22, 128  }
  0x30   : > { %1147 = vsyncadd (%p1292_p10), %s304_s22, 4294967168 }
  0x31   : > { %1149 = dma.done.wait (%p43_p1), [#allocation5], 1152  }
  0x32   : > { %1151 = vsyncadd (%p43_p1), [#allocation5], 4294966144 }
  0x33   : > { %1153 = dma.done.wait (%p43_p1), [#allocation8], 2048  }
  0x34   : > { %1155 = vsyncadd (%p43_p1), [#allocation8], 4294965248  ;;  %v867_v0 = vld [vmem:[#allocation4] sm:$0xff]  ;;  %v363_v1 = vld [vmem:[%s307_s23] sm:$0xff]  ;;  %vm375_vm0 = vcmask 130048   ;;  %p358_p1 = scmp.lt.s32.totalorder %s1242_s8, 1 }
  0x35   : > { %v875_v2 = vld [vmem:[#allocation6 + $0x38] sm:$0xff]  ;;  %v364_v3 = vpack.c.bf16 %v363_v1, %v363_v1  ;;  %386 = vmatpush.bf16.msra.mxu0 %v867_v0  ;;  %v874_v4 = vld [vmem:[#allocation6 + $0x30] sm:$0xff]  ;;  %v873_v5 = vld [vmem:[#allocation6 + $0x28] sm:$0xff]  ;;  %vm643_vm4 = vcmask 31744  }
  0x36   : > { %462 = vmatpush.bf16.msra.mxu1 %v875_v2  ;;  %v872_v6 = vld [vmem:[#allocation6 + $0x20] sm:$0xff]  ;;  %v871_v7 = vld [vmem:[#allocation6 + $0x18] sm:$0xff]  ;;  %v870_v8 = vld [vmem:[#allocation6 + $0x10] sm:$0xff]  ;;  %s1378_s8 = smov (!%p358_p1, %s1242_s8), 1 }
  0x37   : > { %v869_v9 = vld [vmem:[#allocation6 + $0x8] sm:$0xff]  ;;  %v868_v10 = vld [vmem:[#allocation6] sm:$0xff]  ;;  %v883_v11 = vld [vmem:[#allocation7 + $0x38] sm:$0xff]  ;;  %s763_s12 = sshll.u32 %s1378_s8, 3 }
  0x38   : > { %768 = vmatmul.msk.bf16.vlgmr.msra.gmra.mxu0 %vm375_vm0, %v364_v3  ;;  %545 = vmatpush.bf16.msra.mxu2 %v883_v11  ;;  %v882_v12 = vld [vmem:[#allocation7 + $0x30] sm:$0xff]  ;;  %v881_v13 = vld [vmem:[#allocation7 + $0x28] sm:$0xff]  ;;  %v880_v14 = vld [vmem:[#allocation7 + $0x20] sm:$0xff]  ;;  %s361_s16 = scalar_lea.vmem %s1368_s7, %s763_s12 }
  0x39   : > { %v879_v15 = vld [vmem:[#allocation7 + $0x18] sm:$0xff]  ;;  %v878_v16 = vld [vmem:[#allocation7 + $0x10] sm:$0xff]  ;;  %v974_v17 = vld [vmem:[%s1366_s5] ss:$0 sm:$0xff] }
  0x3a   : > { %463 = vmatpush.bf16.msra.mxu1 %v874_v4  ;;  %v877_v24 = vld [vmem:[#allocation7 + $0x8] sm:$0xff]  ;;  %v876_v25 = vld [vmem:[#allocation7] sm:$0xff]  ;;  %v891_v26 = vld [vmem:[#allocation9 + $0x38] sm:$0xff] }
  0x3b   : > { %630 = vmatpush.bf16.msra.mxu3 %v891_v26  ;;  %v890_v27 = vld [vmem:[#allocation9 + $0x30] sm:$0xff]  ;;  %v889_v28 = vld [vmem:[#allocation9 + $0x28] sm:$0xff]  ;;  %v888_v29 = vld [vmem:[#allocation9 + $0x20] sm:$0xff] }
  0x3c   : > { %546 = vmatpush.bf16.msra.mxu2 %v882_v12  ;;  %v887_v30 = vld [vmem:[#allocation9 + $0x18] sm:$0xff]  ;;  %v886_v31 = vld [vmem:[#allocation9 + $0x10] sm:$0xff]  ;;  %v975_v32 = vld [vmem:[%s1366_s5 + $0x1] ss:$0 sm:$0xff] }
  0x3d   : > { %v885_v39 = vld [vmem:[#allocation9 + $0x8] sm:$0xff]  ;;  %v884_v40 = vld [vmem:[#allocation9] sm:$0xff] }
  0x3e   : > { %464 = vmatpush.bf16.msra.mxu1 %v873_v5  ;;  %v976_v41 = vld [vmem:[%s1366_s5 + $0x2] ss:$0 sm:$0xff]  ;;  %v977_v48 = vld [vmem:[%s1367_s6] ss:$0 sm:$0xff] }
  0x3f   : > { %631 = vmatpush.bf16.msra.mxu3 %v890_v27 }
  0x40   : > { %547 = vmatpush.bf16.msra.mxu2 %v881_v13 }
  0x42   : > { %465 = vmatpush.bf16.msra.mxu1 %v872_v6 }
  0x43   : > { %632 = vmatpush.bf16.msra.mxu3 %v889_v28 }
  0x44   : > { %548 = vmatpush.bf16.msra.mxu2 %v880_v14 }
  0x46   : > { %466 = vmatpush.bf16.msra.mxu1 %v871_v7 }
  0x47   : > { %633 = vmatpush.bf16.msra.mxu3 %v888_v29 }
  0x48   : > { %549 = vmatpush.bf16.msra.mxu2 %v879_v15 }
  0x4a   : > { %467 = vmatpush.bf16.msra.mxu1 %v870_v8 }
  0x4b   : > { %634 = vmatpush.bf16.msra.mxu3 %v887_v30 }
  0x4c   : > { %550 = vmatpush.bf16.msra.mxu2 %v878_v16 }
  0x4e   : > { %468 = vmatpush.bf16.msra.mxu1 %v869_v9 }
  0x4f   : > { %635 = vmatpush.bf16.msra.mxu3 %v886_v31 }
  0x50   : > { %551 = vmatpush.bf16.msra.mxu2 %v877_v24 }
  0x52   : > { %469 = vmatpush.bf16.msra.mxu1 %v868_v10 }
  0x53   : > { %636 = vmatpush.bf16.msra.mxu3 %v885_v39 }
  0x54   : > { %552 = vmatpush.bf16.msra.mxu2 %v876_v25 }
  0x57   : > { %637 = vmatpush.bf16.msra.mxu3 %v884_v40 }
  0xb5   : > { %v388_v18 = vpop.f32.mrf.mxu0 }
  0xb6   : > { %v389_v19 = vadd.f32 %v974_v17, %v388_v18 }
  0xb8   : > { %v393_v20 = vmul.f32 0.2, %v389_v19  ;;  %vm392_vm1 = vcmp.ge.f32.partialorder %v389_v19, 0.0 }
  0xba   : > { %v394_v21 = vsel %vm392_vm1, %v389_v19, %v393_v20 }
  0xbb   : > { %v395_v22 = vpack.c.bf16 %v394_v21, %v394_v21 }
  0xbd   : > { %v390_v23 = vpop.f32.mrf.mxu0  ;;  %470 = vmatmul.bf16.vlgmr.msra.gmra.mxu1 %v395_v22 }
 0x13a   : > { %v471_v33 = vpop.f32.mrf.mxu1 }
 0x13b   : > { %v472_v34 = vadd.f32 %v975_v32, %v471_v33 }
 0x13d   : > { %v476_v35 = vmul.f32 0.2, %v472_v34  ;;  %vm475_vm2 = vcmp.ge.f32.partialorder %v472_v34, 0.0 }
 0x13f   : > { %v477_v36 = vsel %vm475_vm2, %v472_v34, %v476_v35 }
 0x140   : > { %v478_v37 = vpack.c.bf16 %v477_v36, %v477_v36 }
 0x142   : > { %v473_v38 = vpop.f32.mrf.mxu1  ;;  %553 = vmatmul.bf16.vlgmr.msra.gmra.mxu2 %v478_v37 }
 0x1c5   : > { %v554_v42 = vpop.f32.mrf.mxu2 }
 0x1c6   : > { %v555_v43 = vadd.f32 %v976_v41, %v554_v42 }
 0x1c8   : > { %v559_v44 = vmul.f32 0.2, %v555_v43  ;;  %vm558_vm3 = vcmp.ge.f32.partialorder %v555_v43, 0.0 }
 0x1ca   : > { %v560_v45 = vsel %vm558_vm3, %v555_v43, %v559_v44 }
 0x1cb   : > { %v561_v46 = vpack.c.bf16 %v560_v45, %v560_v45 }
 0x1cd   : > { %v556_v47 = vpop.f32.mrf.mxu2  ;;  %638 = vmatmul.bf16.vlgmr.msra.gmra.mxu3 %v561_v46 }
 0x250   : > { %v639_v49 = vpop.f32.mrf.mxu3 }
 0x251   : > { %v640_v50 = vadd.f32 %v977_v48, %v639_v49 }
 0x253   : > { %644 = vst.msk [vmem:[%s361_s16] sm:$0xff] %vm643_vm4, %v640_v50 }
 0x258   : > { %v641_v51 = vpop.f32.mrf.mxu3 }
 0x259 PF: > { %p19_p3 = scmp.ge.s32.totalorder %s1277_s13, 4   ;;  %s1373_s24 = smov %s1162_s25 }
 0x25a   : > { %s1374_s25 = smov %s1166_s26  ;;  %s1375_s26 = smov %s1288_s17 }
 0x25b   : > { %s1376_s27 = smov %s1277_s13  ;;  %21 = sbr.rel (!%p19_p3) target bundleno = 5 (0x5), region = 104 }
 0x260   :  { %664 = vsyncpa [#allocation3], 1 }
 0x261   :  { %666 = vsyncpa [#allocation3 + $0x1], 1 }
 0x262   :  { %667 = vsyncpa [#allocation5], 1 }
 0x263   :  { %668 = vsyncpa [#allocation8], 1 }

</bundles_post_ra>
